<compile_context>
chip_gen: v7x
topology: tpu7x:2x2x1
jax: 0.10.0
libtpu: 0.0.40
codegen_flags: <defaults>
</compile_context>

<pallas_src>
import functools

import jax
import jax.numpy as jnp
from jax.experimental import pallas as pl
from jax.experimental.pallas import tpu as pltpu

BN_EPS = 1e-5
LANE = 128
SUBLANE = 8
# bf16 inputs to the MXU (f32 accumulation) -- the native fast path on v5e/v6e/v7x.
USE_BF16_MATMUL = True
MATMUL_DTYPE = jnp.bfloat16 if USE_BF16_MATMUL else jnp.float32


def _round_up(x, m):
    return (x + m - 1) // m * m


def _encoder_kernel(num_layers, n_true, n_pad, tm, *refs):
    """Fused (Linear -> BatchNorm1d(batch stats) -> ReLU) x L with an N-tiled grid.

    Grid = (2 * num_layers, num_row_tiles).
      step = 2*l   : "reduce" phase of layer l (tile matmul, accumulate sum / sumsq)
      step = 2*l+1 : "apply"  phase of layer l (BN affine + ReLU on the stored z tile)
    refs = [x, w_0, sb_0, ..., w_{L-1}, sb_{L-1}, o, h_scr, z_scr, sum_scr, ssq_scr]
    """
    x_ref = refs[0]
    o_ref = refs[1 + 2 * num_layers]
    h_scr = refs[2 + 2 * num_layers]      # (n_pad, max_out)  resident activation (bf16)
    z_scr = refs[3 + 2 * num_layers]      # (n_pad, max_out)  pre-BN activations (f32)
    sum_scr = refs[4 + 2 * num_layers]    # (1, max_out) f32
    ssq_scr = refs[5 + 2 * num_layers]    # (1, max_out) f32

    step = pl.program_id(0)
    t = pl.program_id(1)
    inv_n = 1.0 / n_true
    row0 = pl.multiple_of(t * tm, tm)
    need_mask = (n_pad != n_true)         # static

    for l in range(num_layers):           # static unroll; one guarded region per phase
        w_ref = refs[1 + 2 * l]           # (in_pad_l, out_pad_l)  bf16
        sb_ref = refs[2 + 2 * l]          # (2, out_pad_l) f32 : row0 = gamma, row1 = beta
        in_pad = w_ref.shape[0]
        out_pad = w_ref.shape[1]

        @pl.when(step == 2 * l)
        def _reduce():
            @pl.when(t == 0)
            def _():
                sum_scr[...] = jnp.zeros_like(sum_scr)
                ssq_scr[...] = jnp.zeros_like(ssq_scr)

            if l == 0:
                h = x_ref[...]                                # (tm, in_pad) bf16, pipelined DMA
            else:
                h = h_scr[pl.ds(row0, tm), :in_pad]           # resident bf16 activation
            z = jnp.dot(h, w_ref[...], preferred_element_type=jnp.float32)
            # Linear bias omitted on purpose: batch-mean centering in BN cancels it exactly.
            sum_scr[:, :out_pad] += jnp.sum(z, axis=0, keepdims=True)
            ssq_scr[:, :out_pad] += jnp.sum(z * z, axis=0, keepdims=True)
            z_scr[pl.ds(row0, tm), :out_pad] = z

        @pl.when(step == 2 * l + 1)
        def _apply():
            z = z_scr[pl.ds(row0, tm), :out_pad]
            mean = sum_scr[:, :out_pad] * inv_n
            ex2 = ssq_scr[:, :out_pad] * inv_n
            var = jnp.maximum(ex2 - mean * mean, 0.0)
            sb = sb_ref[...]
            scale = jax.lax.rsqrt(var + BN_EPS) * sb[0:1, :]  # gamma folded into inv_std
            a = jnp.maximum((z - mean) * scale + sb[1:2, :], 0.0)
            if need_mask:
                rows = row0 + jax.lax.broadcasted_iota(jnp.int32, a.shape, 0)
                a = jnp.where(rows < n_true, a, 0.0)          # padded rows stay exactly 0
            if l == num_layers - 1:
                o_ref[...] = a                                # f32 output tile
            else:
                h_scr[pl.ds(row0, tm), :out_pad] = a.astype(h_scr.dtype)


@functools.partial(jax.jit, static_argnames=("block_rows",))
def encoder_forward(x, params, *, block_rows=256):
    """Forward pass of AutoEncoder_Encoder (enc_type='linear', drop_rate=0.0).

    x:      (N, input_dim) float32
    params: list of (w, b, gamma, beta) with w (in_dim, out_dim), b/gamma/beta (1, out_dim)
    """
    n, in_dim = x.shape
    num_layers = len(params)
    out_dim = params[-1][0].shape[1]

    # --- row (batch) tiling ---------------------------------------------------
    tm = _round_up(min(block_rows, _round_up(n, SUBLANE)), SUBLANE)
    n_pad = _round_up(n, tm)
    num_tiles = n_pad // tm

    # --- lane padding + bf16 pre-cast (dense stores, full MXU columns) --------
    in_pad0 = _round_up(in_dim, LANE)
    x_p = jnp.pad(x, ((0, n_pad - n), (0, in_pad0 - in_dim))).astype(MATMUL_DTYPE)

    flat = []
    in_specs = [pl.BlockSpec((tm, in_pad0), lambda s, t: (jnp.where(s == 0, t, 0), 0))]
    prev_pad = in_pad0
    out_pads = []
    for (w, b, gamma, beta) in params:
        od = w.shape[1]
        od_pad = _round_up(od, LANE)
        w_p = jnp.pad(w, ((0, prev_pad - w.shape[0]), (0, od_pad - od))).astype(MATMUL_DTYPE)
        g_p = jnp.pad(gamma, ((0, 0), (0, od_pad - od)), constant_values=1.0)
        be_p = jnp.pad(beta, ((0, 0), (0, od_pad - od)))
        sb = jnp.concatenate([g_p, be_p], axis=0).astype(jnp.float32)   # packed (2, od_pad)
        flat += [w_p, sb]
        in_specs += [pl.BlockSpec((prev_pad, od_pad), lambda s, t: (0, 0)),
                     pl.BlockSpec((2, od_pad), lambda s, t: (0, 0))]
        out_pads.append(od_pad)
        prev_pad = od_pad
        del b  # mathematically cancelled by the batch-stat BatchNorm centering

    max_out = max(out_pads)
    out_pad_last = out_pads[-1]
    s_last = 2 * num_layers - 1

    # --- VMEM residency budget, sized against v7x's 64 MiB physical VMEM ------
    act_elt = 2 if USE_BF16_MATMUL else 4
    resident = 2 * sum(int(a.size) * a.dtype.itemsize for a in flat)     # operands (x2 buffers)
    resident += n_pad * max_out * act_elt                                # h scratch
    resident += n_pad * max_out * 4                                      # z scratch
    resident += 2 * 8 * max_out * 4                                      # stats scratch
    resident += 2 * tm * in_pad0 * act_elt + 2 * tm * out_pad_last * 4   # pipelined x / out blocks
    vmem_limit = int(min(48 << 20, max(resident + (2 << 20), 32 << 20)))

    kernel = functools.partial(_encoder_kernel, num_layers, n, n_pad, tm)

    out_padded = pl.pallas_call(
        kernel,
        out_shape=jax.ShapeDtypeStruct((n_pad, out_pad_last), jnp.float32),
        grid_spec=pltpu.PrefetchScalarGridSpec(
            num_scalar_prefetch=0,
            grid=(2 * num_layers, num_tiles),
            in_specs=in_specs,
            out_specs=pl.BlockSpec(
                (tm, out_pad_last),
                lambda s, t: (jnp.where(s == s_last, t, 0), 0)),
            scratch_shapes=[
                pltpu.VMEM((n_pad, max_out), MATMUL_DTYPE),   # resident inter-layer activation
                pltpu.VMEM((n_pad, max_out), jnp.float32),    # pre-BN z (stats applied in f32)
                pltpu.VMEM((1, max_out), jnp.float32),        # batch sum
                pltpu.VMEM((1, max_out), jnp.float32),        # batch sum of squares
            ],
        ),
        compiler_params=pltpu.CompilerParams(
            dimension_semantics=("arbitrary", "arbitrary"),
            vmem_limit_bytes=vmem_limit),
    )(x_p, *flat)

    # Slice row/lane padding off the final output only (intermediates never leave VMEM).
    return out_padded[:n, :out_dim]


def init_encoder_params(key, input_dim, layer_sizes):
    """Parameter init mimicking the module's shapes.

    Linear(in_dim, out_dim): weight (in_dim, out_dim), bias (1, out_dim)
    BatchNorm1d(out_dim):    gamma = ones, beta = zeros  (torch defaults)
    """
    params = []
    hid_dims = [input_dim] + list(layer_sizes)
    for in_dim, out_dim in zip(hid_dims[:-1], hid_dims[1:]):
        key, kw, kb = jax.random.split(key, 3)
        bound = 1.0 / jnp.sqrt(jnp.float32(in_dim))
        w = jax.random.uniform(kw, (in_dim, out_dim), jnp.float32, -bound, bound)
        b = jax.random.uniform(kb, (1, out_dim), jnp.float32, -bound, bound)
        gamma = jnp.ones((1, out_dim), jnp.float32)
        beta = jnp.zeros((1, out_dim), jnp.float32)
        params.append((w, b, gamma, beta))
    return params


def reference_forward(x, params):
    """Pure-JAX f32 reference (with bias, two-pass variance) for correctness checking."""
    out = x
    for w, b, gamma, beta in params:
        h = out @ w + b
        mean = jnp.mean(h, axis=0, keepdims=True)
        var = jnp.mean((h - mean) ** 2, axis=0, keepdims=True)
        h = (h - mean) / jnp.sqrt(var + BN_EPS) * gamma + beta
        out = jnp.maximum(h, 0.0)
    return out


if __name__ == "__main__":
    key = jax.random.PRNGKey(0)
    key, kx, kp = jax.random.split(key, 3)

    # Small shapes consistent with the module: a batch of feature vectors.
    # batch=40 with block_rows=16 -> 3 row tiles and a masked (ragged) last tile.
    batch = 40
    input_dim = 32
    layer_sizes = [64, 32, 16]

    x = jax.random.normal(kx, (batch, input_dim), jnp.float32)
    params = init_encoder_params(kp, input_dim, layer_sizes)

    out = encoder_forward(x, params, block_rows=16)
    out = jax.block_until_ready(out)

    ref = reference_forward(x, params)
    assert out.shape == (batch, layer_sizes[-1])
    # bf16 MXU inputs (f32 accumulation / f32 BN): loosened tolerance vs. the f32 reference.
    max_err = float(jnp.max(jnp.abs(out - ref)))
    assert jnp.allclose(out, ref, atol=5e-2, rtol=5e-2), f"mismatch vs reference (max|err|={max_err})"

    print("KERNEL_OK")
</pallas_src>

<mosaic_0001>
module attributes {stable_mosaic.version = 11 : i64} {
  func.func @_encoder_kernel(%arg0: i32, %arg1: i32, %arg2: memref<16x128xbf16, #tpu.memory_space<vmem>>, %arg3: memref<128x128xbf16, #tpu.memory_space<vmem>>, %arg4: memref<2x128xf32, #tpu.memory_space<vmem>>, %arg5: memref<128x128xbf16, #tpu.memory_space<vmem>>, %arg6: memref<2x128xf32, #tpu.memory_space<vmem>>, %arg7: memref<128x128xbf16, #tpu.memory_space<vmem>>, %arg8: memref<2x128xf32, #tpu.memory_space<vmem>>, %arg9: memref<16x128xf32, #tpu.memory_space<vmem>>, %arg10: memref<48x128xbf16, #tpu.memory_space<vmem>>, %arg11: memref<48x128xf32, #tpu.memory_space<vmem>>, %arg12: memref<1x128xf32, #tpu.memory_space<vmem>>, %arg13: memref<1x128xf32, #tpu.memory_space<vmem>>) attributes {dimension_semantics = [#tpu.dimension_semantics<arbitrary>, #tpu.dimension_semantics<arbitrary>], iteration_bounds = array<i64: 6, 3>, scalar_prefetch = 0 : i64, scratch_operands = 4 : i64, tpu.core_type = #tpu.core_type<tc>, window_params = [{transform_indices = @transform_0, window_bounds = array<i64: 16, 128>}, {pipeline_mode = #tpu.pipeline_mode<synchronous>, transform_indices = @transform_1, window_bounds = array<i64: 128, 128>}, {pipeline_mode = #tpu.pipeline_mode<synchronous>, transform_indices = @transform_2, window_bounds = array<i64: 2, 128>}, {pipeline_mode = #tpu.pipeline_mode<synchronous>, transform_indices = @transform_3, window_bounds = array<i64: 128, 128>}, {pipeline_mode = #tpu.pipeline_mode<synchronous>, transform_indices = @transform_4, window_bounds = array<i64: 2, 128>}, {pipeline_mode = #tpu.pipeline_mode<synchronous>, transform_indices = @transform_5, window_bounds = array<i64: 128, 128>}, {pipeline_mode = #tpu.pipeline_mode<synchronous>, transform_indices = @transform_6, window_bounds = array<i64: 2, 128>}, {transform_indices = @transform_7, window_bounds = array<i64: 16, 128>}]} {
    %c16_i32 = arith.constant 16 : i32
    %0 = arith.muli %arg1, %c16_i32 : i32
    %1 = tpu.assume_multiple %0, 16 : i32
    %c0_i32 = arith.constant 0 : i32
    %2 = arith.cmpi eq, %arg0, %c0_i32 : i32
    %3 = arith.extui %2 : i1 to i32
    %c0_i32_0 = arith.constant 0 : i32
    %4 = arith.cmpi ne, %3, %c0_i32_0 : i32
    scf.if %4 {
      %c0_i32_6 = arith.constant 0 : i32
      %20 = arith.cmpi eq, %arg1, %c0_i32_6 : i32
      %21 = arith.extui %20 : i1 to i32
      %c0_i32_7 = arith.constant 0 : i32
      %22 = arith.cmpi ne, %21, %c0_i32_7 : i32
      scf.if %22 {
        %cst_22 = arith.constant 0.000000e+00 : f32
        %39 = vector.broadcast %cst_22 : f32 to vector<1x128xf32>
        %c0_23 = arith.constant 0 : index
        %c0_24 = arith.constant 0 : index
        %40 = vector.load %arg12[%c0_23, %c0_24] : memref<1x128xf32, #tpu.memory_space<vmem>>, vector<1x128xf32>
        tpu.vector_store %arg12[%c0_23, %c0_24], %39 {strides = array<i32>} : memref<1x128xf32, #tpu.memory_space<vmem>>, vector<1x128xf32>,
        %cst_25 = arith.constant 0.000000e+00 : f32
        %41 = vector.broadcast %cst_25 : f32 to vector<1x128xf32>
        %c0_26 = arith.constant 0 : index
        %c0_27 = arith.constant 0 : index
        %42 = vector.load %arg13[%c0_26, %c0_27] : memref<1x128xf32, #tpu.memory_space<vmem>>, vector<1x128xf32>
        tpu.vector_store %arg13[%c0_26, %c0_27], %41 {strides = array<i32>} : memref<1x128xf32, #tpu.memory_space<vmem>>, vector<1x128xf32>,
      } else {
      }
      %c0 = arith.constant 0 : index
      %c0_8 = arith.constant 0 : index
      %23 = vector.load %arg2[%c0, %c0_8] : memref<16x128xbf16, #tpu.memory_space<vmem>>, vector<16x128xbf16>
      %c0_9 = arith.constant 0 : index
      %c0_10 = arith.constant 0 : index
      %24 = vector.load %arg3[%c0_9, %c0_10] : memref<128x128xbf16, #tpu.memory_space<vmem>>, vector<128x128xbf16>
      %cst = arith.constant dense<0.000000e+00> : vector<16x128xf32>
      %25 = tpu.matmul %23, %24, %cst {dimension_numbers = #tpu.dot_dimension_numbers<[1], [0], [0], [1], [0, 0, 1, 1], [], []>} : vector<16x128xbf16>, vector<128x128xbf16>, vector<16x128xf32> -> vector<16x128xf32>
      %c0_11 = arith.constant 0 : index
      %c0_12 = arith.constant 0 : index
      %26 = vector.load %arg12[%c0_11, %c0_12] : memref<1x128xf32, #tpu.memory_space<vmem>>, vector<1x128xf32>
      %cst_13 = arith.constant dense<0.000000e+00> : vector<128xf32>
      %27 = vector.multi_reduction <add>, %25, %cst_13 [0] : vector<16x128xf32> to vector<128xf32>
      %28 = vector.shape_cast %27 : vector<128xf32> to vector<1x128xf32>
      %29 = arith.addf %26, %28 : vector<1x128xf32>
      %c0_14 = arith.constant 0 : index
      %c0_15 = arith.constant 0 : index
      %30 = vector.load %arg12[%c0_14, %c0_15] : memref<1x128xf32, #tpu.memory_space<vmem>>, vector<1x128xf32>
      tpu.vector_store %arg12[%c0_14, %c0_15], %29 {strides = array<i32>} : memref<1x128xf32, #tpu.memory_space<vmem>>, vector<1x128xf32>,
      %c0_16 = arith.constant 0 : index
      %c0_17 = arith.constant 0 : index
      %31 = vector.load %arg13[%c0_16, %c0_17] : memref<1x128xf32, #tpu.memory_space<vmem>>, vector<1x128xf32>
      %32 = arith.mulf %25, %25 : vector<16x128xf32>
      %cst_18 = arith.constant dense<0.000000e+00> : vector<128xf32>
      %33 = vector.multi_reduction <add>, %32, %cst_18 [0] : vector<16x128xf32> to vector<128xf32>
      %34 = vector.shape_cast %33 : vector<128xf32> to vector<1x128xf32>
      %35 = arith.addf %31, %34 : vector<1x128xf32>
      %c0_19 = arith.constant 0 : index
      %c0_20 = arith.constant 0 : index
      %36 = vector.load %arg13[%c0_19, %c0_20] : memref<1x128xf32, #tpu.memory_space<vmem>>, vector<1x128xf32>
      tpu.vector_store %arg13[%c0_19, %c0_20], %35 {strides = array<i32>} : memref<1x128xf32, #tpu.memory_space<vmem>>, vector<1x128xf32>,
      %37 = arith.index_cast %1 : i32 to index
      %c0_21 = arith.constant 0 : index
      %38 = vector.load %arg11[%37, %c0_21] : memref<48x128xf32, #tpu.memory_space<vmem>>, vector<16x128xf32>
      tpu.vector_store %arg11[%37, %c0_21], %25 {strides = array<i32>} : memref<48x128xf32, #tpu.memory_space<vmem>>, vector<16x128xf32>,
    } else {
    }
    %c1_i32 = arith.constant 1 : i32
    %5 = arith.cmpi eq, %arg0, %c1_i32 : i32
    %6 = arith.extui %5 : i1 to i32
    %c0_i32_1 = arith.constant 0 : i32
    %7 = arith.cmpi ne, %6, %c0_i32_1 : i32
    scf.if %7 {
      %20 = arith.index_cast %1 : i32 to index
      %c0 = arith.constant 0 : index
      %21 = vector.load %arg11[%20, %c0] : memref<48x128xf32, #tpu.memory_space<vmem>>, vector<16x128xf32>
      %c0_6 = arith.constant 0 : index
      %c0_7 = arith.constant 0 : index
      %22 = vector.load %arg12[%c0_6, %c0_7] : memref<1x128xf32, #tpu.memory_space<vmem>>, vector<1x128xf32>
      %cst = arith.constant 2.500000e-02 : f32
      %23 = vector.broadcast %cst : f32 to vector<1x128xf32>
      %24 = arith.mulf %22, %23 : vector<1x128xf32>
      %c0_8 = arith.constant 0 : index
      %c0_9 = arith.constant 0 : index
      %25 = vector.load %arg13[%c0_8, %c0_9] : memref<1x128xf32, #tpu.memory_space<vmem>>, vector<1x128xf32>
      %cst_10 = arith.constant 2.500000e-02 : f32
      %26 = vector.broadcast %cst_10 : f32 to vector<1x128xf32>
      %27 = arith.mulf %25, %26 : vector<1x128xf32>
      %28 = arith.mulf %24, %24 : vector<1x128xf32>
      %29 = arith.subf %27, %28 : vector<1x128xf32>
      %cst_11 = arith.constant 0.000000e+00 : f32
      %30 = vector.broadcast %cst_11 : f32 to vector<1x128xf32>
      %31 = arith.maximumf %29, %30 : vector<1x128xf32>
      %c0_12 = arith.constant 0 : index
      %c0_13 = arith.constant 0 : index
      %32 = vector.load %arg4[%c0_12, %c0_13] : memref<2x128xf32, #tpu.memory_space<vmem>>, vector<2x128xf32>
      %cst_14 = arith.constant 9.99999974E-6 : f32
      %33 = vector.broadcast %cst_14 : f32 to vector<1x128xf32>
      %34 = arith.addf %31, %33 : vector<1x128xf32>
      %35 = math.rsqrt %34 : vector<1x128xf32>
      %36 = vector.extract_strided_slice %32 {offsets = [0, 0], sizes = [1, 128], strides = [1, 1]} : vector<2x128xf32> to vector<1x128xf32>
      %37 = arith.mulf %35, %36 : vector<1x128xf32>
      %38 = vector.broadcast %24 : vector<1x128xf32> to vector<16x128xf32>
      %39 = arith.subf %21, %38 : vector<16x128xf32>
      %40 = vector.broadcast %37 : vector<1x128xf32> to vector<16x128xf32>
      %41 = arith.mulf %39, %40 : vector<16x128xf32>
      %42 = vector.extract_strided_slice %32 {offsets = [1, 0], sizes = [1, 128], strides = [1, 1]} : vector<2x128xf32> to vector<1x128xf32>
      %43 = vector.broadcast %42 : vector<1x128xf32> to vector<16x128xf32>
      %44 = arith.addf %41, %43 : vector<16x128xf32>
      %cst_15 = arith.constant 0.000000e+00 : f32
      %45 = vector.broadcast %cst_15 : f32 to vector<16x128xf32>
      %46 = arith.maximumf %44, %45 : vector<16x128xf32>
      %47 = tpu.iota {dimensions = array<i32: 0>} : vector<16x128xi32>
      %48 = vector.broadcast %1 : i32 to vector<16x128xi32>
      %49 = arith.addi %48, %47 : vector<16x128xi32>
      %c40_i32 = arith.constant 40 : i32
      %50 = vector.broadcast %c40_i32 : i32 to vector<16x128xi32>
      %51 = arith.cmpi slt, %49, %50 : vector<16x128xi32>
      %cst_16 = arith.constant 0.000000e+00 : f32
      %52 = vector.broadcast %cst_16 : f32 to vector<16x128xf32>
      %53 = arith.select %51, %46, %52 : vector<16x128xi1>, vector<16x128xf32>
      %54 = arith.truncf %53 : vector<16x128xf32> to vector<16x128xbf16>
      %55 = arith.index_cast %1 : i32 to index
      %c0_17 = arith.constant 0 : index
      %56 = vector.load %arg10[%55, %c0_17] : memref<48x128xbf16, #tpu.memory_space<vmem>>, vector<16x128xbf16>
      tpu.vector_store %arg10[%55, %c0_17], %54 {strides = array<i32>} : memref<48x128xbf16, #tpu.memory_space<vmem>>, vector<16x128xbf16>,
    } else {
    }
    %c2_i32 = arith.constant 2 : i32
    %8 = arith.cmpi eq, %arg0, %c2_i32 : i32
    %9 = arith.extui %8 : i1 to i32
    %c0_i32_2 = arith.constant 0 : i32
    %10 = arith.cmpi ne, %9, %c0_i32_2 : i32
    scf.if %10 {
      %c0_i32_6 = arith.constant 0 : i32
      %20 = arith.cmpi eq, %arg1, %c0_i32_6 : i32
      %21 = arith.extui %20 : i1 to i32
      %c0_i32_7 = arith.constant 0 : i32
      %22 = arith.cmpi ne, %21, %c0_i32_7 : i32
      scf.if %22 {
        %cst_21 = arith.constant 0.000000e+00 : f32
        %40 = vector.broadcast %cst_21 : f32 to vector<1x128xf32>
        %c0_22 = arith.constant 0 : index
        %c0_23 = arith.constant 0 : index
        %41 = vector.load %arg12[%c0_22, %c0_23] : memref<1x128xf32, #tpu.memory_space<vmem>>, vector<1x128xf32>
        tpu.vector_store %arg12[%c0_22, %c0_23], %40 {strides = array<i32>} : memref<1x128xf32, #tpu.memory_space<vmem>>, vector<1x128xf32>,
        %cst_24 = arith.constant 0.000000e+00 : f32
        %42 = vector.broadcast %cst_24 : f32 to vector<1x128xf32>
        %c0_25 = arith.constant 0 : index
        %c0_26 = arith.constant 0 : index
        %43 = vector.load %arg13[%c0_25, %c0_26] : memref<1x128xf32, #tpu.memory_space<vmem>>, vector<1x128xf32>
        tpu.vector_store %arg13[%c0_25, %c0_26], %42 {strides = array<i32>} : memref<1x128xf32, #tpu.memory_space<vmem>>, vector<1x128xf32>,
      } else {
      }
      %23 = arith.index_cast %1 : i32 to index
      %c0 = arith.constant 0 : index
      %24 = vector.load %arg10[%23, %c0] : memref<48x128xbf16, #tpu.memory_space<vmem>>, vector<16x128xbf16>
      %c0_8 = arith.constant 0 : index
      %c0_9 = arith.constant 0 : index
      %25 = vector.load %arg5[%c0_8, %c0_9] : memref<128x128xbf16, #tpu.memory_space<vmem>>, vector<128x128xbf16>
      %cst = arith.constant dense<0.000000e+00> : vector<16x128xf32>
      %26 = tpu.matmul %24, %25, %cst {dimension_numbers = #tpu.dot_dimension_numbers<[1], [0], [0], [1], [0, 0, 1, 1], [], []>} : vector<16x128xbf16>, vector<128x128xbf16>, vector<16x128xf32> -> vector<16x128xf32>
      %c0_10 = arith.constant 0 : index
      %c0_11 = arith.constant 0 : index
      %27 = vector.load %arg12[%c0_10, %c0_11] : memref<1x128xf32, #tpu.memory_space<vmem>>, vector<1x128xf32>
      %cst_12 = arith.constant dense<0.000000e+00> : vector<128xf32>
      %28 = vector.multi_reduction <add>, %26, %cst_12 [0] : vector<16x128xf32> to vector<128xf32>
      %29 = vector.shape_cast %28 : vector<128xf32> to vector<1x128xf32>
      %30 = arith.addf %27, %29 : vector<1x128xf32>
      %c0_13 = arith.constant 0 : index
      %c0_14 = arith.constant 0 : index
      %31 = vector.load %arg12[%c0_13, %c0_14] : memref<1x128xf32, #tpu.memory_space<vmem>>, vector<1x128xf32>
      tpu.vector_store %arg12[%c0_13, %c0_14], %30 {strides = array<i32>} : memref<1x128xf32, #tpu.memory_space<vmem>>, vector<1x128xf32>,
      %c0_15 = arith.constant 0 : index
      %c0_16 = arith.constant 0 : index
      %32 = vector.load %arg13[%c0_15, %c0_16] : memref<1x128xf32, #tpu.memory_space<vmem>>, vector<1x128xf32>
      %33 = arith.mulf %26, %26 : vector<16x128xf32>
      %cst_17 = arith.constant dense<0.000000e+00> : vector<128xf32>
      %34 = vector.multi_reduction <add>, %33, %cst_17 [0] : vector<16x128xf32> to vector<128xf32>
      %35 = vector.shape_cast %34 : vector<128xf32> to vector<1x128xf32>
      %36 = arith.addf %32, %35 : vector<1x128xf32>
      %c0_18 = arith.constant 0 : index
      %c0_19 = arith.constant 0 : index
      %37 = vector.load %arg13[%c0_18, %c0_19] : memref<1x128xf32, #tpu.memory_space<vmem>>, vector<1x128xf32>
      tpu.vector_store %arg13[%c0_18, %c0_19], %36 {strides = array<i32>} : memref<1x128xf32, #tpu.memory_space<vmem>>, vector<1x128xf32>,
      %38 = arith.index_cast %1 : i32 to index
      %c0_20 = arith.constant 0 : index
      %39 = vector.load %arg11[%38, %c0_20] : memref<48x128xf32, #tpu.memory_space<vmem>>, vector<16x128xf32>
      tpu.vector_store %arg11[%38, %c0_20], %26 {strides = array<i32>} : memref<48x128xf32, #tpu.memory_space<vmem>>, vector<16x128xf32>,
    } else {
    }
    %c3_i32 = arith.constant 3 : i32
    %11 = arith.cmpi eq, %arg0, %c3_i32 : i32
    %12 = arith.extui %11 : i1 to i32
    %c0_i32_3 = arith.constant 0 : i32
    %13 = arith.cmpi ne, %12, %c0_i32_3 : i32
    scf.if %13 {
      %20 = arith.index_cast %1 : i32 to index
      %c0 = arith.constant 0 : index
      %21 = vector.load %arg11[%20, %c0] : memref<48x128xf32, #tpu.memory_space<vmem>>, vector<16x128xf32>
      %c0_6 = arith.constant 0 : index
      %c0_7 = arith.constant 0 : index
      %22 = vector.load %arg12[%c0_6, %c0_7] : memref<1x128xf32, #tpu.memory_space<vmem>>, vector<1x128xf32>
      %cst = arith.constant 2.500000e-02 : f32
      %23 = vector.broadcast %cst : f32 to vector<1x128xf32>
      %24 = arith.mulf %22, %23 : vector<1x128xf32>
      %c0_8 = arith.constant 0 : index
      %c0_9 = arith.constant 0 : index
      %25 = vector.load %arg13[%c0_8, %c0_9] : memref<1x128xf32, #tpu.memory_space<vmem>>, vector<1x128xf32>
      %cst_10 = arith.constant 2.500000e-02 : f32
      %26 = vector.broadcast %cst_10 : f32 to vector<1x128xf32>
      %27 = arith.mulf %25, %26 : vector<1x128xf32>
      %28 = arith.mulf %24, %24 : vector<1x128xf32>
      %29 = arith.subf %27, %28 : vector<1x128xf32>
      %cst_11 = arith.constant 0.000000e+00 : f32
      %30 = vector.broadcast %cst_11 : f32 to vector<1x128xf32>
      %31 = arith.maximumf %29, %30 : vector<1x128xf32>
      %c0_12 = arith.constant 0 : index
      %c0_13 = arith.constant 0 : index
      %32 = vector.load %arg6[%c0_12, %c0_13] : memref<2x128xf32, #tpu.memory_space<vmem>>, vector<2x128xf32>
      %cst_14 = arith.constant 9.99999974E-6 : f32
      %33 = vector.broadcast %cst_14 : f32 to vector<1x128xf32>
      %34 = arith.addf %31, %33 : vector<1x128xf32>
      %35 = math.rsqrt %34 : vector<1x128xf32>
      %36 = vector.extract_strided_slice %32 {offsets = [0, 0], sizes = [1, 128], strides = [1, 1]} : vector<2x128xf32> to vector<1x128xf32>
      %37 = arith.mulf %35, %36 : vector<1x128xf32>
      %38 = vector.broadcast %24 : vector<1x128xf32> to vector<16x128xf32>
      %39 = arith.subf %21, %38 : vector<16x128xf32>
      %40 = vector.broadcast %37 : vector<1x128xf32> to vector<16x128xf32>
      %41 = arith.mulf %39, %40 : vector<16x128xf32>
      %42 = vector.extract_strided_slice %32 {offsets = [1, 0], sizes = [1, 128], strides = [1, 1]} : vector<2x128xf32> to vector<1x128xf32>
      %43 = vector.broadcast %42 : vector<1x128xf32> to vector<16x128xf32>
      %44 = arith.addf %41, %43 : vector<16x128xf32>
      %cst_15 = arith.constant 0.000000e+00 : f32
      %45 = vector.broadcast %cst_15 : f32 to vector<16x128xf32>
      %46 = arith.maximumf %44, %45 : vector<16x128xf32>
      %47 = tpu.iota {dimensions = array<i32: 0>} : vector<16x128xi32>
      %48 = vector.broadcast %1 : i32 to vector<16x128xi32>
      %49 = arith.addi %48, %47 : vector<16x128xi32>
      %c40_i32 = arith.constant 40 : i32
      %50 = vector.broadcast %c40_i32 : i32 to vector<16x128xi32>
      %51 = arith.cmpi slt, %49, %50 : vector<16x128xi32>
      %cst_16 = arith.constant 0.000000e+00 : f32
      %52 = vector.broadcast %cst_16 : f32 to vector<16x128xf32>
      %53 = arith.select %51, %46, %52 : vector<16x128xi1>, vector<16x128xf32>
      %54 = arith.truncf %53 : vector<16x128xf32> to vector<16x128xbf16>
      %55 = arith.index_cast %1 : i32 to index
      %c0_17 = arith.constant 0 : index
      %56 = vector.load %arg10[%55, %c0_17] : memref<48x128xbf16, #tpu.memory_space<vmem>>, vector<16x128xbf16>
      tpu.vector_store %arg10[%55, %c0_17], %54 {strides = array<i32>} : memref<48x128xbf16, #tpu.memory_space<vmem>>, vector<16x128xbf16>,
    } else {
    }
    %c4_i32 = arith.constant 4 : i32
    %14 = arith.cmpi eq, %arg0, %c4_i32 : i32
    %15 = arith.extui %14 : i1 to i32
    %c0_i32_4 = arith.constant 0 : i32
    %16 = arith.cmpi ne, %15, %c0_i32_4 : i32
    scf.if %16 {
      %c0_i32_6 = arith.constant 0 : i32
      %20 = arith.cmpi eq, %arg1, %c0_i32_6 : i32
      %21 = arith.extui %20 : i1 to i32
      %c0_i32_7 = arith.constant 0 : i32
      %22 = arith.cmpi ne, %21, %c0_i32_7 : i32
      scf.if %22 {
        %cst_21 = arith.constant 0.000000e+00 : f32
        %40 = vector.broadcast %cst_21 : f32 to vector<1x128xf32>
        %c0_22 = arith.constant 0 : index
        %c0_23 = arith.constant 0 : index
        %41 = vector.load %arg12[%c0_22, %c0_23] : memref<1x128xf32, #tpu.memory_space<vmem>>, vector<1x128xf32>
        tpu.vector_store %arg12[%c0_22, %c0_23], %40 {strides = array<i32>} : memref<1x128xf32, #tpu.memory_space<vmem>>, vector<1x128xf32>,
        %cst_24 = arith.constant 0.000000e+00 : f32
        %42 = vector.broadcast %cst_24 : f32 to vector<1x128xf32>
        %c0_25 = arith.constant 0 : index
        %c0_26 = arith.constant 0 : index
        %43 = vector.load %arg13[%c0_25, %c0_26] : memref<1x128xf32, #tpu.memory_space<vmem>>, vector<1x128xf32>
        tpu.vector_store %arg13[%c0_25, %c0_26], %42 {strides = array<i32>} : memref<1x128xf32, #tpu.memory_space<vmem>>, vector<1x128xf32>,
      } else {
      }
      %23 = arith.index_cast %1 : i32 to index
      %c0 = arith.constant 0 : index
      %24 = vector.load %arg10[%23, %c0] : memref<48x128xbf16, #tpu.memory_space<vmem>>, vector<16x128xbf16>
      %c0_8 = arith.constant 0 : index
      %c0_9 = arith.constant 0 : index
      %25 = vector.load %arg7[%c0_8, %c0_9] : memref<128x128xbf16, #tpu.memory_space<vmem>>, vector<128x128xbf16>
      %cst = arith.constant dense<0.000000e+00> : vector<16x128xf32>
      %26 = tpu.matmul %24, %25, %cst {dimension_numbers = #tpu.dot_dimension_numbers<[1], [0], [0], [1], [0, 0, 1, 1], [], []>} : vector<16x128xbf16>, vector<128x128xbf16>, vector<16x128xf32> -> vector<16x128xf32>
      %c0_10 = arith.constant 0 : index
      %c0_11 = arith.constant 0 : index
      %27 = vector.load %arg12[%c0_10, %c0_11] : memref<1x128xf32, #tpu.memory_space<vmem>>, vector<1x128xf32>
      %cst_12 = arith.constant dense<0.000000e+00> : vector<128xf32>
      %28 = vector.multi_reduction <add>, %26, %cst_12 [0] : vector<16x128xf32> to vector<128xf32>
      %29 = vector.shape_cast %28 : vector<128xf32> to vector<1x128xf32>
      %30 = arith.addf %27, %29 : vector<1x128xf32>
      %c0_13 = arith.constant 0 : index
      %c0_14 = arith.constant 0 : index
      %31 = vector.load %arg12[%c0_13, %c0_14] : memref<1x128xf32, #tpu.memory_space<vmem>>, vector<1x128xf32>
      tpu.vector_store %arg12[%c0_13, %c0_14], %30 {strides = array<i32>} : memref<1x128xf32, #tpu.memory_space<vmem>>, vector<1x128xf32>,
      %c0_15 = arith.constant 0 : index
      %c0_16 = arith.constant 0 : index
      %32 = vector.load %arg13[%c0_15, %c0_16] : memref<1x128xf32, #tpu.memory_space<vmem>>, vector<1x128xf32>
      %33 = arith.mulf %26, %26 : vector<16x128xf32>
      %cst_17 = arith.constant dense<0.000000e+00> : vector<128xf32>
      %34 = vector.multi_reduction <add>, %33, %cst_17 [0] : vector<16x128xf32> to vector<128xf32>
      %35 = vector.shape_cast %34 : vector<128xf32> to vector<1x128xf32>
      %36 = arith.addf %32, %35 : vector<1x128xf32>
      %c0_18 = arith.constant 0 : index
      %c0_19 = arith.constant 0 : index
      %37 = vector.load %arg13[%c0_18, %c0_19] : memref<1x128xf32, #tpu.memory_space<vmem>>, vector<1x128xf32>
      tpu.vector_store %arg13[%c0_18, %c0_19], %36 {strides = array<i32>} : memref<1x128xf32, #tpu.memory_space<vmem>>, vector<1x128xf32>,
      %38 = arith.index_cast %1 : i32 to index
      %c0_20 = arith.constant 0 : index
      %39 = vector.load %arg11[%38, %c0_20] : memref<48x128xf32, #tpu.memory_space<vmem>>, vector<16x128xf32>
      tpu.vector_store %arg11[%38, %c0_20], %26 {strides = array<i32>} : memref<48x128xf32, #tpu.memory_space<vmem>>, vector<16x128xf32>,
    } else {
    }
    %c5_i32 = arith.constant 5 : i32
    %17 = arith.cmpi eq, %arg0, %c5_i32 : i32
    %18 = arith.extui %17 : i1 to i32
    %c0_i32_5 = arith.constant 0 : i32
    %19 = arith.cmpi ne, %18, %c0_i32_5 : i32
    scf.if %19 {
      %20 = arith.index_cast %1 : i32 to index
      %c0 = arith.constant 0 : index
      %21 = vector.load %arg11[%20, %c0] : memref<48x128xf32, #tpu.memory_space<vmem>>, vector<16x128xf32>
      %c0_6 = arith.constant 0 : index
      %c0_7 = arith.constant 0 : index
      %22 = vector.load %arg12[%c0_6, %c0_7] : memref<1x128xf32, #tpu.memory_space<vmem>>, vector<1x128xf32>
      %cst = arith.constant 2.500000e-02 : f32
      %23 = vector.broadcast %cst : f32 to vector<1x128xf32>
      %24 = arith.mulf %22, %23 : vector<1x128xf32>
      %c0_8 = arith.constant 0 : index
      %c0_9 = arith.constant 0 : index
      %25 = vector.load %arg13[%c0_8, %c0_9] : memref<1x128xf32, #tpu.memory_space<vmem>>, vector<1x128xf32>
      %cst_10 = arith.constant 2.500000e-02 : f32
      %26 = vector.broadcast %cst_10 : f32 to vector<1x128xf32>
      %27 = arith.mulf %25, %26 : vector<1x128xf32>
      %28 = arith.mulf %24, %24 : vector<1x128xf32>
      %29 = arith.subf %27, %28 : vector<1x128xf32>
      %cst_11 = arith.constant 0.000000e+00 : f32
      %30 = vector.broadcast %cst_11 : f32 to vector<1x128xf32>
      %31 = arith.maximumf %29, %30 : vector<1x128xf32>
      %c0_12 = arith.constant 0 : index
      %c0_13 = arith.constant 0 : index
      %32 = vector.load %arg8[%c0_12, %c0_13] : memref<2x128xf32, #tpu.memory_space<vmem>>, vector<2x128xf32>
      %cst_14 = arith.constant 9.99999974E-6 : f32
      %33 = vector.broadcast %cst_14 : f32 to vector<1x128xf32>
      %34 = arith.addf %31, %33 : vector<1x128xf32>
      %35 = math.rsqrt %34 : vector<1x128xf32>
      %36 = vector.extract_strided_slice %32 {offsets = [0, 0], sizes = [1, 128], strides = [1, 1]} : vector<2x128xf32> to vector<1x128xf32>
      %37 = arith.mulf %35, %36 : vector<1x128xf32>
      %38 = vector.broadcast %24 : vector<1x128xf32> to vector<16x128xf32>
      %39 = arith.subf %21, %38 : vector<16x128xf32>
      %40 = vector.broadcast %37 : vector<1x128xf32> to vector<16x128xf32>
      %41 = arith.mulf %39, %40 : vector<16x128xf32>
      %42 = vector.extract_strided_slice %32 {offsets = [1, 0], sizes = [1, 128], strides = [1, 1]} : vector<2x128xf32> to vector<1x128xf32>
      %43 = vector.broadcast %42 : vector<1x128xf32> to vector<16x128xf32>
      %44 = arith.addf %41, %43 : vector<16x128xf32>
      %cst_15 = arith.constant 0.000000e+00 : f32
      %45 = vector.broadcast %cst_15 : f32 to vector<16x128xf32>
      %46 = arith.maximumf %44, %45 : vector<16x128xf32>
      %47 = tpu.iota {dimensions = array<i32: 0>} : vector<16x128xi32>
      %48 = vector.broadcast %1 : i32 to vector<16x128xi32>
      %49 = arith.addi %48, %47 : vector<16x128xi32>
      %c40_i32 = arith.constant 40 : i32
      %50 = vector.broadcast %c40_i32 : i32 to vector<16x128xi32>
      %51 = arith.cmpi slt, %49, %50 : vector<16x128xi32>
      %cst_16 = arith.constant 0.000000e+00 : f32
      %52 = vector.broadcast %cst_16 : f32 to vector<16x128xf32>
      %53 = arith.select %51, %46, %52 : vector<16x128xi1>, vector<16x128xf32>
      %c0_17 = arith.constant 0 : index
      %c0_18 = arith.constant 0 : index
      %54 = vector.load %arg9[%c0_17, %c0_18] : memref<16x128xf32, #tpu.memory_space<vmem>>, vector<16x128xf32>
      tpu.vector_store %arg9[%c0_17, %c0_18], %53 {strides = array<i32>} : memref<16x128xf32, #tpu.memory_space<vmem>>, vector<16x128xf32>,
    } else {
    }
    return
  }
  func.func @transform_0(%arg0: i32, %arg1: i32) -> (i32, i32) {
    %c0_i32 = arith.constant 0 : i32
    %0 = arith.cmpi eq, %arg0, %c0_i32 : i32
    %c0_i32_0 = arith.constant 0 : i32
    %1 = arith.select %0, %arg1, %c0_i32_0 : i32
    %c0_i32_1 = arith.constant 0 : i32
    %c0_i32_2 = arith.constant 0 : i32
    return %1, %c0_i32_1 : i32, i32
  }
  func.func @transform_1(%arg0: i32, %arg1: i32) -> (i32, i32) {
    %c0_i32 = arith.constant 0 : i32
    %c0_i32_0 = arith.constant 0 : i32
    %c0_i32_1 = arith.constant 0 : i32
    return %c0_i32, %c0_i32_0 : i32, i32
  }
  func.func @transform_2(%arg0: i32, %arg1: i32) -> (i32, i32) {
    %c0_i32 = arith.constant 0 : i32
    %c0_i32_0 = arith.constant 0 : i32
    %c0_i32_1 = arith.constant 0 : i32
    return %c0_i32, %c0_i32_0 : i32, i32
  }
  func.func @transform_3(%arg0: i32, %arg1: i32) -> (i32, i32) {
    %c0_i32 = arith.constant 0 : i32
    %c0_i32_0 = arith.constant 0 : i32
    %c0_i32_1 = arith.constant 0 : i32
    return %c0_i32, %c0_i32_0 : i32, i32
  }
  func.func @transform_4(%arg0: i32, %arg1: i32) -> (i32, i32) {
    %c0_i32 = arith.constant 0 : i32
    %c0_i32_0 = arith.constant 0 : i32
    %c0_i32_1 = arith.constant 0 : i32
    return %c0_i32, %c0_i32_0 : i32, i32
  }
  func.func @transform_5(%arg0: i32, %arg1: i32) -> (i32, i32) {
    %c0_i32 = arith.constant 0 : i32
    %c0_i32_0 = arith.constant 0 : i32
    %c0_i32_1 = arith.constant 0 : i32
    return %c0_i32, %c0_i32_0 : i32, i32
  }
  func.func @transform_6(%arg0: i32, %arg1: i32) -> (i32, i32) {
    %c0_i32 = arith.constant 0 : i32
    %c0_i32_0 = arith.constant 0 : i32
    %c0_i32_1 = arith.constant 0 : i32
    return %c0_i32, %c0_i32_0 : i32, i32
  }
  func.func @transform_7(%arg0: i32, %arg1: i32) -> (i32, i32) {
    %c5_i32 = arith.constant 5 : i32
    %0 = arith.cmpi eq, %arg0, %c5_i32 : i32
    %c0_i32 = arith.constant 0 : i32
    %1 = arith.select %0, %arg1, %c0_i32 : i32
    %c0_i32_0 = arith.constant 0 : i32
    %c0_i32_1 = arith.constant 0 : i32
    return %1, %c0_i32_0 : i32, i32
  }
}

</mosaic_0001>

<bundles_post_ra>
// kernel: encoder_forward.1
= control target key start
LH: loop header
LB: loop body
LE: loop exit
PB: predicated region body
PF: predicated region fallthrough
CT: control target
= control target key end

     0   :  { %s1328_s24 = smov 0   ;;  %s1330_s25 = smov 0   ;;  %s1500_s0 = inlined_call_operand.vmem [shape: bf16[48,128], index: 0, kind: input, shape index: {}]   ;;  %s1501_s1 = inlined_call_operand.vmem [shape: bf16[128,128], index: 1, kind: input, shape index: {}]   ;;  %s1502_s2 = inlined_call_operand.vmem [shape: f32[2,128], index: 2, kind: input, shape index: {}]   ;;  %s1503_s3 = inlined_call_operand.vmem [shape: bf16[128,128], index: 3, kind: input, shape index: {}]   ;;  %s1504_s4 = inlined_call_operand.vmem [shape: f32[2,128], index: 4, kind: input, shape index: {}]   ;;  %s1505_s5 = inlined_call_operand.vmem [shape: bf16[128,128], index: 5, kind: input, shape index: {}]   ;;  %s1506_s6 = inlined_call_operand.vmem [shape: f32[2,128], index: 6, kind: input, shape index: {}]   ;;  %s1507_s7 = inlined_call_operand.vmem [shape: f32[48,128], index: 7, kind: output, shape index: {}]  }
   0x1   :  { %s1332_s26 = smov 0   ;;  %s1334_s27 = smov 0  }
   0x2   :  { %s1336_s28 = smov 0  }
   0x3 LB: > { %s26_s29 = sadd.s32 1, %s1269_s26  ;;  %s29_s30 = sadd.s32 1, %s1273_s27  ;;  %s1277_s28 = sphi %s1336_s28, %s17_s28   ;;  %s1273_s27 = sphi %s1334_s27, %s1511_s27   ;;  %s1269_s26 = sphi %s1332_s26, %s1510_s26   ;;  %s1265_s25 = sphi %s1330_s25, %s1509_s25   ;;  %s1261_s24 = sphi %s1328_s24, %s1508_s24  }
   0x4   : > { %p27_p0 = scmp.ge.s32.totalorder %s26_s29, 3  ;;  %p1026_p1 = scmp.ge.s32.totalorder %s1277_s28, 1 }
   0x5   : > { %p262_p2 = scmp.lt.s32.totalorder %s1277_s28, 19 }
   0x6   : > { %s1513_s29 = smov (%p27_p0, %s26_s29), 0  ;;  %s1515_s30 = smov (!%p27_p0, %s29_s30), %s1273_s27 }
   0x7   : > { %p263_p3 = pnand %p1026_p1, %p262_p2  ;;  %p31_p4 = scmp.ge.s32.totalorder %s1515_s30, 6 }
   0x8   : > { %p298_p5 = scmp.eq.s32.totalorder (!%p263_p3), %s1265_s25, 0  ;;  %p308_p6 = scmp.eq.s32.totalorder (!%p263_p3), %s1265_s25, 5 }
   0x9   : > { %s1517_s30 = smov (%p31_p4, %s1515_s30), 0  ;;  %266 = sbr.rel (%p263_p3) target bundleno = 980 (0x3d4), region = 48 }
   0xa   : > { %s1365_s8 = sshll.u32 (!%p263_p3), %s1261_s24, 4  ;;  %p1032_p9 = scmp.ne.s32.totalorder (!%p263_p3), %s1265_s25, 0 }
  0x10   : > { %s299_s9 = scalar_select %p298_p5, %s1261_s24, 0 }
  0x11   : > { %s309_s10 = scalar_select %p308_p6, %s1261_s24, 0 }
  0x12   : > { %s1027_s11 = sshll.u32 %s299_s9, 1  ;;  %323 = sbr.rel (%p1032_p9) target bundleno = 298 (0x12a), region = 52 }
  0x13   : > { %p301_p7 = scmp.lt.s32.totalorder %s1027_s11, 5  ;;  %s1029_s12 = sshll.u32 %s309_s10, 1 }
  0x14   : > { %p311_p8 = scmp.lt.s32.totalorder %s1029_s12, 5  ;;  %p1033_p10 = scmp.ne.s32.totalorder (!%p1032_p9), %s1261_s24, 0 }
  0x15   : > { %s1519_s11 = smov (!%p301_p7, %s1027_s11), 5 }
  0x16   : > { %s1521_s12 = smov (!%p311_p8, %s1029_s12), 5  ;;  %s1028_s13 = sshll.u32 %s1519_s11, 2 }
  0x17   : > { %s1372_s16 = scalar_lea.vmem %s1500_s0, %s1028_s13  ;;  %s1030_s17 = sshll.u32 %s1521_s12, 3 }
  0x18   : > { %s1377_s20 = scalar_lea.vmem %s1507_s7, %s1030_s17 }
  0x19   : > { %327 = sbr.rel (%p1033_p10) target bundleno = 32 (0x20), region = 56  ;;  %v1279_v0 = vmov (!%p1033_p10), 0.0  }
  0x1a   : > { %328 = vst [vmem:[#allocation4] sm:$0x1] (!%p1033_p10), %v1279_v0  ;;  %329 = vst [vmem:[#allocation5] sm:$0x1] (!%p1033_p10), %v1279_v0 }
  0x20 PF: > { %v1208_v1 = vld [vmem:[%s1501_s1] sm:$0xff]   ;;  %v1280_v2 = vmov 0.0   ;;  %v1209_v3 = vld [vmem:[%s1501_s1 + $0x8] sm:$0xff]   ;;  %vm1281_vm0 = vmmov 0   ;;  %v1210_v4 = vld [vmem:[%s1501_s1 + $0x10] sm:$0xff]   ;;  %s465_s9 = scalar_lea.vmem [#allocation3], %s1365_s8 }
  0x21   : > { %1099 = vmatprep.subr.bf16.mxu0 %v1280_v2  ;;  %1115 = vmatprep.mubr.msk.bf16.mxu0 %vm1281_vm0, %v1280_v2  ;;  %v1211_v5 = vld [vmem:[%s1501_s1 + $0x18] sm:$0xff]   ;;  %v1212_v6 = vld [vmem:[%s1501_s1 + $0x20] sm:$0xff]   ;;  %v1213_v7 = vld [vmem:[%s1501_s1 + $0x28] sm:$0xff]  }
  0x22   : > { %1100 = vmatpush3.bf16.msra.mxu0 %v1208_v1  ;;  %v1214_v8 = vld [vmem:[%s1501_s1 + $0x30] sm:$0xff]   ;;  %v1215_v9 = vld [vmem:[%s1501_s1 + $0x38] sm:$0xff]   ;;  %v1216_v10 = vld [vmem:[%s1372_s16] sm:$0xff]  }
  0x23   : > { %1101 = vmatprep.subr.bf16.mxu0 %v1280_v2  ;;  %v443_v28 = vld [vmem:[#allocation4] sm:$0x1]  ;;  %v453_v31 = vld [vmem:[#allocation5] sm:$0x1] }
  0x26   : > { %1102 = vmatpush3.bf16.msra.mxu0 %v1209_v3 }
  0x27   : > { %1103 = vmatprep.subr.bf16.mxu0 %v1280_v2 }
  0x2a   : > { %1104 = vmatpush3.bf16.msra.mxu0 %v1210_v4 }
  0x2b   : > { %1105 = vmatprep.subr.bf16.mxu0 %v1280_v2 }
  0x2e   : > { %1106 = vmatpush3.bf16.msra.mxu0 %v1211_v5 }
  0x2f   : > { %1107 = vmatprep.subr.bf16.mxu0 %v1280_v2 }
  0x32   : > { %1108 = vmatpush3.bf16.msra.mxu0 %v1212_v6 }
  0x33   : > { %1109 = vmatprep.subr.bf16.mxu0 %v1280_v2 }
  0x36   : > { %1110 = vmatpush3.bf16.msra.mxu0 %v1213_v7 }
  0x37   : > { %1111 = vmatprep.subr.bf16.mxu0 %v1280_v2 }
  0x3a   : > { %1112 = vmatpush3.bf16.msra.mxu0 %v1214_v8 }
  0x3b   : > { %1113 = vmatprep.subr.bf16.mxu0 %v1280_v2 }
  0x3e   : > { %1114 = vmatpush3.bf16.msra.mxu0 %v1215_v9 }
  0x41   : > { %1116 = vmatmul.mubr.bf16.vlgmr.msra.gmra.mrb[0].mxu0 %v1216_v10 }
 0x114   : > { %v436_v11 = vpop.f32.mrb[0].mxu0 }
 0x115   : > { %466 = vst [vmem:[%s465_s9] sm:$0xff] %v436_v11  ;;  %v1117_v12 = vpop.f32.mrb[1].mxu0  ;;  %v454_v14 = vmul.f32 %v436_v11, %v436_v11 }
 0x116   : > { %v439_v13 = vpop.f32.mrb[2].mxu0 }
 0x117   : > { %v444_v15 = vadd.f32 %v439_v13, %v436_v11  ;;  %v455_v16 = vmul.f32 %v439_v13, %v439_v13  ;;  %467 = vst [vmem:[%s465_s9 + $0x8] sm:$0xff] %v439_v13  ;;  %v1118_v17 = vpop.f32.mrb[3].mxu0 }
 0x119   : > { %v445_v18 = vrot.slane %v444_v15, 4  ;;  %v456_v19 = vadd.f32 %v455_v16, %v454_v14 }
 0x11b   : > { %v446_v20 = vadd.f32 %v445_v18, %v444_v15  ;;  %v457_v21 = vrot.slane %v456_v19, 4 }
 0x11d   : > { %v447_v22 = vrot.slane %v446_v20, 2  ;;  %v458_v23 = vadd.f32 %v457_v21, %v456_v19 }
 0x11f   : > { %v448_v24 = vadd.f32 %v447_v22, %v446_v20  ;;  %v459_v25 = vrot.slane %v458_v23, 2 }
 0x121   : > { %v449_v26 = vrot.slane %v448_v24, 1  ;;  %v460_v27 = vadd.f32 %v459_v25, %v458_v23 }
 0x123   : > { %v450_v29 = vadd.f32 %v449_v26, %v448_v24  ;;  %v461_v30 = vrot.slane %v460_v27, 1 }
 0x125   : > { %v451_v32 = vadd.f32 %v450_v29, %v443_v28  ;;  %v462_v33 = vadd.f32 %v461_v30, %v460_v27 }
 0x127   : > { %452 = vst [vmem:[#allocation4] sm:$0x1] %v451_v32  ;;  %v463_v34 = vadd.f32 %v462_v33, %v453_v31 }
 0x129   : > { %464 = vst [vmem:[#allocation5] sm:$0x1] %v463_v34 }
 0x12a PF: > { %p1043_p11 = scmp.ne.s32.totalorder %s1265_s25, 1 }
 0x12b   : > { %v487_v41 = vlaneseq (!%p1043_p11)  ;;  %s472_s16 = scalar_lea.vmem (!%p1043_p11), [#allocation3], %s1365_s8  ;;  %v482_v49 = vld [vmem:[%s1502_s2] sm:$0x3] (!%p1043_p11)  ;;  %v513_v56 = vstv (!%p1043_p11), %s1365_s8  ;;  %s521_s12 = sshra.s32 (!%p1043_p11), %s1365_s8, 4 }
 0x12c   : > { %471 = sbr.rel (%p1043_p11) target bundleno = 338 (0x152), region = 60  ;;  %v473_v47 = vld [vmem:[%s472_s16] sm:$0xff] (!%p1043_p11)  ;;  %v474_v48 = vld [vmem:[%s472_s16 + $0x8] sm:$0xff] (!%p1043_p11)  ;;  %s1044_s13 = sshll.u32 (!%p1043_p11), %s521_s12, 3 }
 0x12d   : > { %v488_v44 = vshrl.u32 (!%p1043_p11), %v487_v41, 7  ;;  %s524_s14 = scalar_lea.vmem (!%p1043_p11), [#allocation2], %s1044_s13 }
 0x12e   : > { %v475_v35 = vld [vmem:[#allocation4] sm:$0x1] (!%p1043_p11) }
 0x12f   : > { %v476_v37 = vmul.f32 (!%p1043_p11), 0.025, %v475_v35  ;;  %v489_v45 = vsub.s32 (!%p1043_p11), 0, %v488_v44  ;;  %v504_v50 = vsub.s32 (!%p1043_p11), 1, %v488_v44  ;;  %v512_v52 = vadd.s32 (!%p1043_p11), 8, %v488_v44 }
 0x130   : > { %v477_v36 = vld [vmem:[#allocation5] sm:$0x1] (!%p1043_p11)  ;;  %v514_v59 = vadd.s32 (!%p1043_p11), %v513_v56, %v488_v44 }
 0x131   : > { %v478_v38 = vmul.f32 (!%p1043_p11), 0.025, %v477_v36  ;;  %v479_v39 = vmul.f32 (!%p1043_p11), %v476_v37, %v476_v37  ;;  %v490_v46 = vrot.slane (!%p1043_p11), %v476_v37, %v489_v45  ;;  %v505_v58 = vrot.slane (!%p1043_p11), %v482_v49, %v504_v50 }
 0x132   : > { %v515_v60 = vadd.s32 (!%p1043_p11), %v513_v56, %v512_v52  ;;  %vm516_vm1 = vcmp.lt.s32.totalorder (!%p1043_p11), %v514_v59, 40 }
 0x133   : > { %v480_v40 = vsub.f32 %v478_v38, %v479_v39  ;;  %v492_v54 = vsub.f32 %v473_v47, %v490_v46  ;;  %v493_v55 = vsub.f32 %v474_v48, %v490_v46 }
 0x134   : > { %vm517_vm2 = vcmp.lt.s32.totalorder %v515_v60, 40 }
 0x135   : > { %v481_v42 = vmax.f32 %v480_v40, 0.0 }
 0x137   : > { %v483_v43 = vadd.f32 1e-05, %v481_v42 }
 0x139   : > { %1217 = vrsqrt.f32 %v483_v43 }
 0x143   : > { %v1218_v51 = vpop.eup %1217 }
 0x144   : > { %v485_v53 = vmul.f32 %v1218_v51, %v482_v49 }
 0x146   : > { %v498_v57 = vrot.slane %v485_v53, %v489_v45 }
 0x148   : > { %v500_v61 = vmul.f32 %v498_v57, %v492_v54  ;;  %v501_v62 = vmul.f32 %v498_v57, %v493_v55 }
 0x14a   : > { %v506_v63 = vadd.f32 %v505_v58, %v500_v61  ;;  %v507_v0 = vadd.f32 %v505_v58, %v501_v62 }
 0x14c   : > { %v508_v1 = vmax.f32 %v506_v63, 0.0  ;;  %v509_v2 = vmax.f32 %v507_v0, 0.0 }
 0x14e   : > { %v518_v3 = vsel %vm516_vm1, %v508_v1, 0.0  ;;  %v519_v4 = vsel %vm517_vm2, %v509_v2, 0.0 }
 0x14f   : > { %v520_v5 = vpack.c.bf16 %v519_v4, %v518_v3 }
 0x151   : > { %525 = vst [vmem:[%s524_s14] sm:$0xff] %v520_v5 }
 0x152 PF: > { %p1045_p12 = scmp.ne.s32.totalorder %s1265_s25, 2 }
 0x153   : > { %p1046_p13 = scmp.ne.s32.totalorder (!%p1045_p12), %s1261_s24, 0 }
 0x154   : > { %529 = sbr.rel (%p1045_p12) target bundleno = 620 (0x26c), region = 64 }
 0x15b   : > { %533 = sbr.rel (%p1046_p13) target bundleno = 354 (0x162), region = 68  ;;  %v1282_v6 = vmov (!%p1046_p13), 0.0  }
 0x15c   : > { %534 = vst [vmem:[#allocation4] sm:$0x1] (!%p1046_p13), %v1282_v6  ;;  %535 = vst [vmem:[#allocation5] sm:$0x1] (!%p1046_p13), %v1282_v6 }
 0x162 PF: > { %v1219_v7 = vld [vmem:[%s1503_s3] sm:$0xff]   ;;  %v1283_v8 = vmov 0.0   ;;  %v1220_v9 = vld [vmem:[%s1503_s3 + $0x8] sm:$0xff]   ;;  %vm1284_vm3 = vmmov 0   ;;  %v1221_v10 = vld [vmem:[%s1503_s3 + $0x10] sm:$0xff]   ;;  %s536_s13 = sshra.s32 %s1365_s8, 4 }
 0x163   : > { %1119 = vmatprep.subr.bf16.mxu0 %v1283_v8  ;;  %1135 = vmatprep.mubr.msk.bf16.mxu0 %vm1284_vm3, %v1283_v8  ;;  %v1222_v11 = vld [vmem:[%s1503_s3 + $0x18] sm:$0xff]   ;;  %v1223_v12 = vld [vmem:[%s1503_s3 + $0x20] sm:$0xff]   ;;  %v1224_v13 = vld [vmem:[%s1503_s3 + $0x28] sm:$0xff]   ;;  %s1047_s17 = sshll.u32 %s536_s13, 3  ;;  %s668_s22 = scalar_lea.vmem [#allocation3], %s1365_s8 }
 0x164   : > { %1120 = vmatpush3.bf16.msra.mxu0 %v1219_v7  ;;  %v1225_v14 = vld [vmem:[%s1503_s3 + $0x30] sm:$0xff]   ;;  %v1226_v15 = vld [vmem:[%s1503_s3 + $0x38] sm:$0xff]   ;;  %s539_s21 = scalar_lea.vmem [#allocation2], %s1047_s17  ;;  %v646_v34 = vld [vmem:[#allocation4] sm:$0x1] }
 0x165   : > { %1121 = vmatprep.subr.bf16.mxu0 %v1283_v8  ;;  %v540_v16 = vld [vmem:[%s539_s21] sm:$0xff]  ;;  %v656_v37 = vld [vmem:[#allocation5] sm:$0x1] }
 0x168   : > { %1122 = vmatpush3.bf16.msra.mxu0 %v1220_v9 }
 0x169   : > { %1123 = vmatprep.subr.bf16.mxu0 %v1283_v8 }
 0x16c   : > { %1124 = vmatpush3.bf16.msra.mxu0 %v1221_v10 }
 0x16d   : > { %1125 = vmatprep.subr.bf16.mxu0 %v1283_v8 }
 0x170   : > { %1126 = vmatpush3.bf16.msra.mxu0 %v1222_v11 }
 0x171   : > { %1127 = vmatprep.subr.bf16.mxu0 %v1283_v8 }
 0x174   : > { %1128 = vmatpush3.bf16.msra.mxu0 %v1223_v12 }
 0x175   : > { %1129 = vmatprep.subr.bf16.mxu0 %v1283_v8 }
 0x178   : > { %1130 = vmatpush3.bf16.msra.mxu0 %v1224_v13 }
 0x179   : > { %1131 = vmatprep.subr.bf16.mxu0 %v1283_v8 }
 0x17c   : > { %1132 = vmatpush3.bf16.msra.mxu0 %v1225_v14 }
 0x17d   : > { %1133 = vmatprep.subr.bf16.mxu0 %v1283_v8 }
 0x180   : > { %1134 = vmatpush3.bf16.msra.mxu0 %v1226_v15 }
 0x183   : > { %1136 = vmatmul.mubr.bf16.vlgmr.msra.gmra.mrb[0].mxu0 %v540_v16 }
 0x256   : > { %v639_v17 = vpop.f32.mrb[0].mxu0 }
 0x257   : > { %669 = vst [vmem:[%s668_s22] sm:$0xff] %v639_v17  ;;  %v1137_v18 = vpop.f32.mrb[1].mxu0  ;;  %v657_v20 = vmul.f32 %v639_v17, %v639_v17 }
 0x258   : > { %v642_v19 = vpop.f32.mrb[2].mxu0 }
 0x259   : > { %v647_v21 = vadd.f32 %v642_v19, %v639_v17  ;;  %v658_v22 = vmul.f32 %v642_v19, %v642_v19  ;;  %670 = vst [vmem:[%s668_s22 + $0x8] sm:$0xff] %v642_v19  ;;  %v1138_v23 = vpop.f32.mrb[3].mxu0 }
 0x25b   : > { %v648_v24 = vrot.slane %v647_v21, 4  ;;  %v659_v25 = vadd.f32 %v658_v22, %v657_v20 }
 0x25d   : > { %v649_v26 = vadd.f32 %v648_v24, %v647_v21  ;;  %v660_v27 = vrot.slane %v659_v25, 4 }
 0x25f   : > { %v650_v28 = vrot.slane %v649_v26, 2  ;;  %v661_v29 = vadd.f32 %v660_v27, %v659_v25 }
 0x261   : > { %v651_v30 = vadd.f32 %v650_v28, %v649_v26  ;;  %v662_v31 = vrot.slane %v661_v29, 2 }
 0x263   : > { %v652_v32 = vrot.slane %v651_v30, 1  ;;  %v663_v33 = vadd.f32 %v662_v31, %v661_v29 }
 0x265   : > { %v653_v35 = vadd.f32 %v652_v32, %v651_v30  ;;  %v664_v36 = vrot.slane %v663_v33, 1 }
 0x267   : > { %v654_v38 = vadd.f32 %v653_v35, %v646_v34  ;;  %v665_v39 = vadd.f32 %v664_v36, %v663_v33 }
 0x269   : > { %655 = vst [vmem:[#allocation4] sm:$0x1] %v654_v38  ;;  %v666_v40 = vadd.f32 %v665_v39, %v656_v37 }
 0x26b   : > { %667 = vst [vmem:[#allocation5] sm:$0x1] %v666_v40 }
 0x26c PF: > { %p1056_p0 = scmp.ne.s32.totalorder %s1265_s25, 3 }
 0x26d   : > { %v690_v47 = vlaneseq (!%p1056_p0)  ;;  %s675_s23 = scalar_lea.vmem (!%p1056_p0), [#allocation3], %s1365_s8  ;;  %v685_v55 = vld [vmem:[%s1504_s4] sm:$0x3] (!%p1056_p0)  ;;  %v716_v62 = vstv (!%p1056_p0), %s1365_s8  ;;  %s724_s10 = sshra.s32 (!%p1056_p0), %s1365_s8, 4 }
 0x26e   : > { %674 = sbr.rel (%p1056_p0) target bundleno = 660 (0x294), region = 72  ;;  %v676_v53 = vld [vmem:[%s675_s23] sm:$0xff] (!%p1056_p0)  ;;  %v677_v54 = vld [vmem:[%s675_s23 + $0x8] sm:$0xff] (!%p1056_p0)  ;;  %s1057_s11 = sshll.u32 (!%p1056_p0), %s724_s10, 3 }
 0x26f   : > { %v691_v50 = vshrl.u32 (!%p1056_p0), %v690_v47, 7  ;;  %s727_s12 = scalar_lea.vmem (!%p1056_p0), [#allocation2], %s1057_s11 }
 0x270   : > { %v678_v41 = vld [vmem:[#allocation4] sm:$0x1] (!%p1056_p0) }
 0x271   : > { %v679_v43 = vmul.f32 (!%p1056_p0), 0.025, %v678_v41  ;;  %v692_v51 = vsub.s32 (!%p1056_p0), 0, %v691_v50  ;;  %v707_v56 = vsub.s32 (!%p1056_p0), 1, %v691_v50  ;;  %v715_v58 = vadd.s32 (!%p1056_p0), 8, %v691_v50 }
 0x272   : > { %v680_v42 = vld [vmem:[#allocation5] sm:$0x1] (!%p1056_p0)  ;;  %v717_v1 = vadd.s32 (!%p1056_p0), %v716_v62, %v691_v50 }
 0x273   : > { %v681_v44 = vmul.f32 (!%p1056_p0), 0.025, %v680_v42  ;;  %v682_v45 = vmul.f32 (!%p1056_p0), %v679_v43, %v679_v43  ;;  %v693_v52 = vrot.slane (!%p1056_p0), %v679_v43, %v692_v51  ;;  %v708_v0 = vrot.slane (!%p1056_p0), %v685_v55, %v707_v56 }
 0x274   : > { %v718_v2 = vadd.s32 (!%p1056_p0), %v716_v62, %v715_v58  ;;  %vm719_vm4 = vcmp.lt.s32.totalorder (!%p1056_p0), %v717_v1, 40 }
 0x275   : > { %v683_v46 = vsub.f32 %v681_v44, %v682_v45  ;;  %v695_v60 = vsub.f32 %v676_v53, %v693_v52  ;;  %v696_v61 = vsub.f32 %v677_v54, %v693_v52 }
 0x276   : > { %vm720_vm5 = vcmp.lt.s32.totalorder %v718_v2, 40 }
 0x277   : > { %v684_v48 = vmax.f32 %v683_v46, 0.0 }
 0x279   : > { %v686_v49 = vadd.f32 1e-05, %v684_v48 }
 0x27b   : > { %1227 = vrsqrt.f32 %v686_v49 }
 0x285   : > { %v1228_v57 = vpop.eup %1227 }
 0x286   : > { %v688_v59 = vmul.f32 %v1228_v57, %v685_v55 }
 0x288   : > { %v701_v63 = vrot.slane %v688_v59, %v692_v51 }
 0x28a   : > { %v703_v3 = vmul.f32 %v701_v63, %v695_v60  ;;  %v704_v4 = vmul.f32 %v701_v63, %v696_v61 }
 0x28c   : > { %v709_v5 = vadd.f32 %v708_v0, %v703_v3  ;;  %v710_v6 = vadd.f32 %v708_v0, %v704_v4 }
 0x28e   : > { %v711_v7 = vmax.f32 %v709_v5, 0.0  ;;  %v712_v8 = vmax.f32 %v710_v6, 0.0 }
 0x290   : > { %v721_v9 = vsel %vm719_vm4, %v711_v7, 0.0  ;;  %v722_v10 = vsel %vm720_vm5, %v712_v8, 0.0 }
 0x291   : > { %v723_v11 = vpack.c.bf16 %v722_v10, %v721_v9 }
 0x293   : > { %728 = vst [vmem:[%s727_s12] sm:$0xff] %v723_v11 }
 0x294 PF: > { %p1058_p1 = scmp.ne.s32.totalorder %s1265_s25, 4 }
 0x295   : > { %p1059_p2 = scmp.ne.s32.totalorder (!%p1058_p1), %s1261_s24, 0 }
 0x296   : > { %732 = sbr.rel (%p1058_p1) target bundleno = 942 (0x3ae), region = 76 }
 0x29d   : > { %736 = sbr.rel (%p1059_p2) target bundleno = 676 (0x2a4), region = 80  ;;  %v1285_v12 = vmov (!%p1059_p2), 0.0  }
 0x29e   : > { %737 = vst [vmem:[#allocation4] sm:$0x1] (!%p1059_p2), %v1285_v12  ;;  %738 = vst [vmem:[#allocation5] sm:$0x1] (!%p1059_p2), %v1285_v12 }
 0x2a4 PF: > { %v1229_v13 = vld [vmem:[%s1505_s5] sm:$0xff]   ;;  %v1286_v14 = vmov 0.0   ;;  %v1230_v15 = vld [vmem:[%s1505_s5 + $0x8] sm:$0xff]   ;;  %vm1287_vm6 = vmmov 0   ;;  %v1231_v16 = vld [vmem:[%s1505_s5 + $0x10] sm:$0xff]   ;;  %s739_s10 = sshra.s32 %s1365_s8, 4 }
 0x2a5   : > { %1139 = vmatprep.subr.bf16.mxu0 %v1286_v14  ;;  %1155 = vmatprep.mubr.msk.bf16.mxu0 %vm1287_vm6, %v1286_v14  ;;  %v1232_v17 = vld [vmem:[%s1505_s5 + $0x18] sm:$0xff]   ;;  %v1233_v18 = vld [vmem:[%s1505_s5 + $0x20] sm:$0xff]   ;;  %v1234_v19 = vld [vmem:[%s1505_s5 + $0x28] sm:$0xff]   ;;  %s1060_s13 = sshll.u32 %s739_s10, 3  ;;  %s871_s24 = scalar_lea.vmem [#allocation3], %s1365_s8 }
 0x2a6   : > { %1140 = vmatpush3.bf16.msra.mxu0 %v1229_v13  ;;  %v1235_v20 = vld [vmem:[%s1505_s5 + $0x30] sm:$0xff]   ;;  %v1236_v21 = vld [vmem:[%s1505_s5 + $0x38] sm:$0xff]   ;;  %s742_s17 = scalar_lea.vmem [#allocation2], %s1060_s13  ;;  %v849_v40 = vld [vmem:[#allocation4] sm:$0x1] }
 0x2a7   : > { %1141 = vmatprep.subr.bf16.mxu0 %v1286_v14  ;;  %v743_v22 = vld [vmem:[%s742_s17] sm:$0xff]  ;;  %v859_v43 = vld [vmem:[#allocation5] sm:$0x1] }
 0x2aa   : > { %1142 = vmatpush3.bf16.msra.mxu0 %v1230_v15 }
 0x2ab   : > { %1143 = vmatprep.subr.bf16.mxu0 %v1286_v14 }
 0x2ae   : > { %1144 = vmatpush3.bf16.msra.mxu0 %v1231_v16 }
 0x2af   : > { %1145 = vmatprep.subr.bf16.mxu0 %v1286_v14 }
 0x2b2   : > { %1146 = vmatpush3.bf16.msra.mxu0 %v1232_v17 }
 0x2b3   : > { %1147 = vmatprep.subr.bf16.mxu0 %v1286_v14 }
 0x2b6   : > { %1148 = vmatpush3.bf16.msra.mxu0 %v1233_v18 }
 0x2b7   : > { %1149 = vmatprep.subr.bf16.mxu0 %v1286_v14 }
 0x2ba   : > { %1150 = vmatpush3.bf16.msra.mxu0 %v1234_v19 }
 0x2bb   : > { %1151 = vmatprep.subr.bf16.mxu0 %v1286_v14 }
 0x2be   : > { %1152 = vmatpush3.bf16.msra.mxu0 %v1235_v20 }
 0x2bf   : > { %1153 = vmatprep.subr.bf16.mxu0 %v1286_v14 }
 0x2c2   : > { %1154 = vmatpush3.bf16.msra.mxu0 %v1236_v21 }
 0x2c5   : > { %1156 = vmatmul.mubr.bf16.vlgmr.msra.gmra.mrb[0].mxu0 %v743_v22 }
 0x398   : > { %v842_v23 = vpop.f32.mrb[0].mxu0 }
 0x399   : > { %872 = vst [vmem:[%s871_s24] sm:$0xff] %v842_v23  ;;  %v1157_v24 = vpop.f32.mrb[1].mxu0  ;;  %v860_v26 = vmul.f32 %v842_v23, %v842_v23 }
 0x39a   : > { %v845_v25 = vpop.f32.mrb[2].mxu0 }
 0x39b   : > { %v850_v27 = vadd.f32 %v845_v25, %v842_v23  ;;  %v861_v28 = vmul.f32 %v845_v25, %v845_v25  ;;  %873 = vst [vmem:[%s871_s24 + $0x8] sm:$0xff] %v845_v25  ;;  %v1158_v29 = vpop.f32.mrb[3].mxu0 }
 0x39d   : > { %v851_v30 = vrot.slane %v850_v27, 4  ;;  %v862_v31 = vadd.f32 %v861_v28, %v860_v26 }
 0x39f   : > { %v852_v32 = vadd.f32 %v851_v30, %v850_v27  ;;  %v863_v33 = vrot.slane %v862_v31, 4 }
 0x3a1   : > { %v853_v34 = vrot.slane %v852_v32, 2  ;;  %v864_v35 = vadd.f32 %v863_v33, %v862_v31 }
 0x3a3   : > { %v854_v36 = vadd.f32 %v853_v34, %v852_v32  ;;  %v865_v37 = vrot.slane %v864_v35, 2 }
 0x3a5   : > { %v855_v38 = vrot.slane %v854_v36, 1  ;;  %v866_v39 = vadd.f32 %v865_v37, %v864_v35 }
 0x3a7   : > { %v856_v41 = vadd.f32 %v855_v38, %v854_v36  ;;  %v867_v42 = vrot.slane %v866_v39, 1 }
 0x3a9   : > { %v857_v44 = vadd.f32 %v856_v41, %v849_v40  ;;  %v868_v45 = vadd.f32 %v867_v42, %v866_v39 }
 0x3ab   : > { %858 = vst [vmem:[#allocation4] sm:$0x1] %v857_v44  ;;  %v869_v46 = vadd.f32 %v868_v45, %v859_v43 }
 0x3ad   : > { %870 = vst [vmem:[#allocation5] sm:$0x1] %v869_v46 }
 0x3ae PF: > { %p1069_p3 = scmp.ne.s32.totalorder %s1265_s25, 5 }
 0x3af   : > { %v893_v53 = vlaneseq (!%p1069_p3)  ;;  %s878_s18 = scalar_lea.vmem (!%p1069_p3), [#allocation3], %s1365_s8  ;;  %v888_v60 = vld [vmem:[%s1506_s6] sm:$0x3] (!%p1069_p3)  ;;  %v919_v3 = vstv (!%p1069_p3), %s1365_s8 }
 0x3b0   : > { %877 = sbr.rel (%p1069_p3) target bundleno = 980 (0x3d4), region = 84  ;;  %v879_v59 = vld [vmem:[%s878_s18] sm:$0xff] (!%p1069_p3)  ;;  %v880_v61 = vld [vmem:[%s878_s18 + $0x8] sm:$0xff] (!%p1069_p3) }
 0x3b1   : > { %v894_v56 = vshrl.u32 (!%p1069_p3), %v893_v53, 7 }
 0x3b2   : > { %v881_v47 = vld [vmem:[#allocation4] sm:$0x1] (!%p1069_p3) }
 0x3b3   : > { %v882_v49 = vmul.f32 (!%p1069_p3), 0.025, %v881_v47  ;;  %v895_v57 = vsub.s32 (!%p1069_p3), 0, %v894_v56  ;;  %v910_v62 = vsub.s32 (!%p1069_p3), 1, %v894_v56  ;;  %v918_v0 = vadd.s32 (!%p1069_p3), 8, %v894_v56 }
 0x3b4   : > { %v883_v48 = vld [vmem:[#allocation5] sm:$0x1] (!%p1069_p3)  ;;  %v920_v7 = vadd.s32 (!%p1069_p3), %v919_v3, %v894_v56 }
 0x3b5   : > { %v884_v50 = vmul.f32 (!%p1069_p3), 0.025, %v883_v48  ;;  %v885_v51 = vmul.f32 (!%p1069_p3), %v882_v49, %v882_v49  ;;  %v896_v58 = vrot.slane (!%p1069_p3), %v882_v49, %v895_v57  ;;  %v911_v6 = vrot.slane (!%p1069_p3), %v888_v60, %v910_v62 }
 0x3b6   : > { %v921_v8 = vadd.s32 (!%p1069_p3), %v919_v3, %v918_v0  ;;  %vm922_vm7 = vcmp.lt.s32.totalorder (!%p1069_p3), %v920_v7, 40 }
 0x3b7   : > { %v886_v52 = vsub.f32 %v884_v50, %v885_v51  ;;  %v898_v2 = vsub.f32 %v879_v59, %v896_v58  ;;  %v899_v4 = vsub.f32 %v880_v61, %v896_v58 }
 0x3b8   : > { %vm923_vm8 = vcmp.lt.s32.totalorder %v921_v8, 40 }
 0x3b9   : > { %v887_v54 = vmax.f32 %v886_v52, 0.0 }
 0x3bb   : > { %v889_v55 = vadd.f32 1e-05, %v887_v54 }
 0x3bd   : > { %1237 = vrsqrt.f32 %v889_v55 }
 0x3c7   : > { %v1238_v63 = vpop.eup %1237 }
 0x3c8   : > { %v891_v1 = vmul.f32 %v1238_v63, %v888_v60 }
 0x3ca   : > { %v904_v5 = vrot.slane %v891_v1, %v895_v57 }
 0x3cc   : > { %v906_v9 = vmul.f32 %v904_v5, %v898_v2  ;;  %v907_v10 = vmul.f32 %v904_v5, %v899_v4 }
 0x3ce   : > { %v912_v11 = vadd.f32 %v911_v6, %v906_v9  ;;  %v913_v12 = vadd.f32 %v911_v6, %v907_v10 }
 0x3d0   : > { %v914_v13 = vmax.f32 %v912_v11, 0.0  ;;  %v915_v14 = vmax.f32 %v913_v12, 0.0 }
 0x3d2   : > { %v924_v15 = vsel %vm922_vm7, %v914_v13, 0.0  ;;  %v925_v16 = vsel %vm923_vm8, %v915_v14, 0.0 }
 0x3d3   : > { %926 = vst [vmem:[%s1377_s20] sm:$0xff] %v924_v15  ;;  %927 = vst [vmem:[%s1377_s20 + $0x8] sm:$0xff] %v925_v16 }
 0x3d4 PF: > { %s17_s28 = sadd.s32 1, %s1277_s28   ;;  %s1508_s24 = smov %s1269_s26 }
 0x3d5   : > { %p14_p4 = scmp.ge.s32.totalorder %s17_s28, 20   ;;  %s1509_s25 = smov %s1273_s27 }
 0x3d6   : > { %s1510_s26 = smov %s1513_s29  ;;  %s1511_s27 = smov %s1517_s30 }
 0x3d7   :  { %16 = sbr.rel (!%p14_p4) target bundleno = 3 (0x3), region = 124 }

</bundles_post_ra>
